<compile_context>
chip_gen: v5e
topology: v5e:2x2
jax: 0.10.0
libtpu: 0.0.40
codegen_flags: <defaults>
</compile_context>

<pallas_src>
import math

import jax
import jax.numpy as jnp
from jax.experimental import pallas as pl
from jax.experimental.pallas import tpu as pltpu

# OGB atom feature cardinalities (get_atom_feature_dims()).
FULL_ATOM_FEATURE_DIMS = [119, 4, 12, 12, 10, 6, 6, 2, 2]
NUM_FEATURES = len(FULL_ATOM_FEATURE_DIMS)

LO_ROWS = 128                       # feature 0 (dim 119) owns rows/lanes 0..127
HI_ROWS = 128                       # features 1..8 (sum 54) live in rows 128..181
TOTAL_ROWS = LO_ROWS + HI_ROWS      # 256

# Offsets of features 1..8 within the high half (Python ints -> folded into the
# in-kernel compares, no extra HBM pass over x).
HI_OFFSETS = []
_o = 0
for _d in FULL_ATOM_FEATURE_DIMS[1:]:
    HI_OFFSETS.append(_o)
    _o += _d
assert _o <= HI_ROWS


def _round_up(x, m):
    return (x + m - 1) // m * m


def _atom_encoder_kernel(x_ref, w_ref, o_ref):
    """x_ref: (tm, F) int32 ids; w_ref: (256, emb_dim) bf16/f32; o_ref: (tm, emb_dim)."""
    tm = x_ref.shape[0]
    idx = x_ref[...]                                            # (tm, F) int32

    # Low half: only feature 0 lives in lanes 0..127 -> a single compare.
    iota_lo = jax.lax.broadcasted_iota(jnp.int32, (tm, LO_ROWS), 1)
    m_lo = (iota_lo == idx[:, 0][:, None]).astype(w_ref.dtype)

    # High half: features 1..8 occupy disjoint ranges of lanes 0..127 of the
    # second vreg column-group, so boolean OR of the one-hots is exact.
    iota_hi = jax.lax.broadcasted_iota(jnp.int32, (tm, HI_ROWS), 1)
    hit = None
    for i, off in enumerate(HI_OFFSETS):
        h = iota_hi == (idx[:, i + 1][:, None] + off)
        hit = h if hit is None else (hit | h)
    m_hi = hit.astype(w_ref.dtype)

    # Sum-of-lookups == multi-hot @ packed-table, split per 128-row half (MXU).
    acc = jnp.dot(m_lo, w_ref[0:LO_ROWS, :], preferred_element_type=jnp.float32)
    acc = acc + jnp.dot(m_hi, w_ref[LO_ROWS:TOTAL_ROWS, :],
                        preferred_element_type=jnp.float32)
    o_ref[...] = acc.astype(o_ref.dtype)


def pack_atom_encoder_tables(weight_tables, *, dtype=jnp.bfloat16):
    """Pack the 9 per-feature tables ONCE into W[256, emb_dim].

    Layout: feature 0 -> rows 0..118 (block padded to 128), features 1..8 ->
    rows 128..181, remainder zero.  bf16 is the default (fast MXU path; only
    the weights round — the mask side is exactly 0/1).  Pass dtype=jnp.float32
    for bit-exact parity with an f32 reference.
    """
    emb_dim = weight_tables[0].shape[1]
    w_pad = jnp.zeros((TOTAL_ROWS, emb_dim), dtype)
    w_pad = w_pad.at[0:FULL_ATOM_FEATURE_DIMS[0], :].set(
        weight_tables[0].astype(dtype))
    row = LO_ROWS
    for t in weight_tables[1:]:
        w_pad = w_pad.at[row:row + t.shape[0], :].set(t.astype(dtype))
        row += t.shape[0]
    return w_pad, emb_dim


def atom_encoder_forward_packed(x, w_pad, emb_dim, *, tm=2048,
                                out_dtype=jnp.float32, vmem_limit_bytes=None):
    """x: int32 [N, F]; w_pad: packed table from pack_atom_encoder_tables."""
    N, F = x.shape
    assert F == NUM_FEATURES
    assert w_pad.shape[0] == TOTAL_ROWS and w_pad.shape[1] == emb_dim

    # Row tile: big (amortizes the ~600-cycle per-grid-step overhead and feeds
    # the MXU), but capped so the 1-D grid has at least 2 steps — with
    # dimension_semantics=("parallel",) both v7x TensorCores then get work.
    tm = max(8, min(int(tm), _round_up(-(-N // 2), 8)))
    tm = _round_up(tm, 8)
    n_pad = _round_up(N, tm)

    x_p = x.astype(jnp.int32)
    if n_pad != N:
        x_p = jnp.pad(x_p, ((0, n_pad - N), (0, 0)))            # tail sliced off below

    grid = (n_pad // tm,)

    if vmem_limit_bytes is None:
        # Double-buffered x + out (lane-padded in VMEM) + W + mask intermediate,
        # with 2x headroom; clamp to 48 MiB (leave slack on v7x's 64 MiB VMEM).
        tile_bytes = (
            2 * tm * 128 * 4                                     # x (int32, lane-padded)
            + 2 * tm * _round_up(emb_dim, 128) * jnp.dtype(out_dtype).itemsize
            + 2 * TOTAL_ROWS * _round_up(emb_dim, 128) * w_pad.dtype.itemsize
            + tm * TOTAL_ROWS * 4                                # mask / f32 acc scratch
        )
        vmem_limit_bytes = int(min(max(2 * tile_bytes, 8 << 20), 48 << 20))

    cost = pl.CostEstimate(
        flops=2 * n_pad * TOTAL_ROWS * emb_dim,
        transcendentals=0,
        bytes_accessed=(
            n_pad * F * 4
            + n_pad * emb_dim * jnp.dtype(out_dtype).itemsize
            + TOTAL_ROWS * emb_dim * w_pad.dtype.itemsize
        ),
    )

    out = pl.pallas_call(
        _atom_encoder_kernel,
        out_shape=jax.ShapeDtypeStruct((n_pad, emb_dim), out_dtype),
        grid_spec=pltpu.PrefetchScalarGridSpec(
            num_scalar_prefetch=0,
            grid=grid,
            in_specs=[
                pl.BlockSpec((tm, F), lambda n: (n, 0)),
                pl.BlockSpec((TOTAL_ROWS, emb_dim), lambda n: (0, 0)),
            ],
            out_specs=pl.BlockSpec((tm, emb_dim), lambda n: (n, 0)),
        ),
        compiler_params=pltpu.CompilerParams(
            dimension_semantics=("parallel",),      # shards the row grid across TCs
            vmem_limit_bytes=vmem_limit_bytes,
        ),
        cost_estimate=cost,
    )(x_p, w_pad)

    return out[:N]


def atom_encoder_forward(x, weight_tables, *, tm=2048, dtype=jnp.bfloat16):
    """Convenience wrapper: packs tables then runs the kernel."""
    w_pad, emb_dim = pack_atom_encoder_tables(weight_tables, dtype=dtype)
    return atom_encoder_forward_packed(x, w_pad, emb_dim, tm=tm)


def init_atom_encoder_params(key, emb_dim):
    """Deterministic xavier_uniform init, one table per atom feature."""
    tables = []
    for i, dim in enumerate(FULL_ATOM_FEATURE_DIMS):
        k = jax.random.fold_in(key, i)
        bound = math.sqrt(6.0 / (dim + emb_dim))
        tables.append(
            jax.random.uniform(k, (dim, emb_dim), jnp.float32, -bound, bound)
        )
    return tables


def atom_encoder_reference(x, weight_tables):
    """Pure-JAX reference mirroring the PyTorch forward."""
    out = 0
    for i in range(x.shape[1]):
        out = out + weight_tables[i][x[:, i]]
    return out


def _make_features(key, n):
    cols = []
    for i, dim in enumerate(FULL_ATOM_FEATURE_DIMS):
        ki = jax.random.fold_in(key, i)
        cols.append(jax.random.randint(ki, (n, 1), 0, dim, dtype=jnp.int32))
    return jnp.concatenate(cols, axis=1)                        # [n, F] int32


if __name__ == "__main__":
    key = jax.random.PRNGKey(0)
    emb_dim = 32

    # Deterministic parameters, packed once.
    tables = init_atom_encoder_params(jax.random.fold_in(key, 1000), emb_dim)

    # bf16 path (default): mask is exact 0/1, only the weights round, so compare
    # against a reference built from the bf16-rounded tables.
    w_bf16, edim = pack_atom_encoder_tables(tables, dtype=jnp.bfloat16)
    tables_bf16 = [t.astype(jnp.bfloat16).astype(jnp.float32) for t in tables]

    # --- small test (tm capped so the grid still has 2 steps) ---
    N1 = 16
    x1 = _make_features(jax.random.fold_in(key, 1), N1)
    out1 = jax.block_until_ready(atom_encoder_forward_packed(x1, w_bf16, edim))
    ref1 = atom_encoder_reference(x1, tables_bf16)
    assert out1.shape == (N1, emb_dim)
    assert jnp.allclose(out1, ref1, atol=1e-3, rtol=1e-3), "bf16 mismatch (N=16)"

    # --- ragged-N test (exercises padding + multi-step grid) ---
    N2 = 300
    x2 = _make_features(jax.random.fold_in(key, 2), N2)
    out2 = jax.block_until_ready(atom_encoder_forward_packed(x2, w_bf16, edim))
    ref2 = atom_encoder_reference(x2, tables_bf16)
    assert out2.shape == (N2, emb_dim)
    assert jnp.allclose(out2, ref2, atol=1e-3, rtol=1e-3), "bf16 mismatch (N=300)"

    # --- exact-semantics check with f32-packed table vs. pure f32 reference ---
    w_f32, _ = pack_atom_encoder_tables(tables, dtype=jnp.float32)
    N3 = 64
    x3 = _make_features(jax.random.fold_in(key, 3), N3)
    out3 = jax.block_until_ready(atom_encoder_forward_packed(x3, w_f32, edim))
    ref3 = atom_encoder_reference(x3, tables)
    assert out3.shape == (N3, emb_dim)
    assert jnp.allclose(out3, ref3, atol=1e-5, rtol=1e-5), "f32 mismatch (N=64)"

    print("KERNEL_OK")
</pallas_src>

<mosaic_0001>
module attributes {stable_mosaic.version = 11 : i64} {
  func.func @_atom_encoder_kernel(%arg0: i32, %arg1: memref<8x9xi32, #tpu.memory_space<vmem>>, %arg2: memref<256x32xbf16, #tpu.memory_space<vmem>>, %arg3: memref<8x32xf32, #tpu.memory_space<vmem>>) attributes {dimension_semantics = [#tpu.dimension_semantics<parallel>], iteration_bounds = array<i64: 2>, scalar_prefetch = 0 : i64, scratch_operands = 0 : i64, tpu.core_type = #tpu.core_type<tc>, window_params = [{transform_indices = @transform_0, window_bounds = array<i64: 8, 9>}, {pipeline_mode = #tpu.pipeline_mode<synchronous>, transform_indices = @transform_1, window_bounds = array<i64: 256, 32>}, {transform_indices = @transform_2, window_bounds = array<i64: 8, 32>}]} {
    %c0 = arith.constant 0 : index
    %c0_0 = arith.constant 0 : index
    %0 = vector.load %arg1[%c0, %c0_0] : memref<8x9xi32, #tpu.memory_space<vmem>>, vector<8x9xi32>
    %1 = tpu.iota {dimensions = array<i32: 1>} : vector<8x128xi32>
    %2 = vector.extract_strided_slice %0 {offsets = [0, 0], sizes = [8, 1], strides = [1, 1]} : vector<8x9xi32> to vector<8x1xi32>
    %3 = vector.shape_cast %2 : vector<8x1xi32> to vector<8xi32>
    %4 = vector.shape_cast %3 : vector<8xi32> to vector<8x1xi32>
    %5 = vector.broadcast %4 : vector<8x1xi32> to vector<8x128xi32>
    %6 = arith.cmpi eq, %1, %5 : vector<8x128xi32>
    %7 = arith.extui %6 : vector<8x128xi1> to vector<8x128xi32>
    %8 = arith.sitofp %7 : vector<8x128xi32> to vector<8x128xf32>
    %9 = arith.truncf %8 : vector<8x128xf32> to vector<8x128xbf16>
    %10 = tpu.iota {dimensions = array<i32: 1>} : vector<8x128xi32>
    %11 = vector.extract_strided_slice %0 {offsets = [0, 1], sizes = [8, 1], strides = [1, 1]} : vector<8x9xi32> to vector<8x1xi32>
    %12 = vector.shape_cast %11 : vector<8x1xi32> to vector<8xi32>
    %13 = vector.shape_cast %12 : vector<8xi32> to vector<8x1xi32>
    %c0_i32 = arith.constant 0 : i32
    %14 = vector.broadcast %c0_i32 : i32 to vector<8x1xi32>
    %15 = arith.addi %13, %14 : vector<8x1xi32>
    %16 = vector.broadcast %15 : vector<8x1xi32> to vector<8x128xi32>
    %17 = arith.cmpi eq, %10, %16 : vector<8x128xi32>
    %18 = vector.extract_strided_slice %0 {offsets = [0, 2], sizes = [8, 1], strides = [1, 1]} : vector<8x9xi32> to vector<8x1xi32>
    %19 = vector.shape_cast %18 : vector<8x1xi32> to vector<8xi32>
    %20 = vector.shape_cast %19 : vector<8xi32> to vector<8x1xi32>
    %c4_i32 = arith.constant 4 : i32
    %21 = vector.broadcast %c4_i32 : i32 to vector<8x1xi32>
    %22 = arith.addi %20, %21 : vector<8x1xi32>
    %23 = vector.broadcast %22 : vector<8x1xi32> to vector<8x128xi32>
    %24 = arith.cmpi eq, %10, %23 : vector<8x128xi32>
    %25 = arith.ori %17, %24 : vector<8x128xi1>
    %26 = vector.extract_strided_slice %0 {offsets = [0, 3], sizes = [8, 1], strides = [1, 1]} : vector<8x9xi32> to vector<8x1xi32>
    %27 = vector.shape_cast %26 : vector<8x1xi32> to vector<8xi32>
    %28 = vector.shape_cast %27 : vector<8xi32> to vector<8x1xi32>
    %c16_i32 = arith.constant 16 : i32
    %29 = vector.broadcast %c16_i32 : i32 to vector<8x1xi32>
    %30 = arith.addi %28, %29 : vector<8x1xi32>
    %31 = vector.broadcast %30 : vector<8x1xi32> to vector<8x128xi32>
    %32 = arith.cmpi eq, %10, %31 : vector<8x128xi32>
    %33 = arith.ori %25, %32 : vector<8x128xi1>
    %34 = vector.extract_strided_slice %0 {offsets = [0, 4], sizes = [8, 1], strides = [1, 1]} : vector<8x9xi32> to vector<8x1xi32>
    %35 = vector.shape_cast %34 : vector<8x1xi32> to vector<8xi32>
    %36 = vector.shape_cast %35 : vector<8xi32> to vector<8x1xi32>
    %c28_i32 = arith.constant 28 : i32
    %37 = vector.broadcast %c28_i32 : i32 to vector<8x1xi32>
    %38 = arith.addi %36, %37 : vector<8x1xi32>
    %39 = vector.broadcast %38 : vector<8x1xi32> to vector<8x128xi32>
    %40 = arith.cmpi eq, %10, %39 : vector<8x128xi32>
    %41 = arith.ori %33, %40 : vector<8x128xi1>
    %42 = vector.extract_strided_slice %0 {offsets = [0, 5], sizes = [8, 1], strides = [1, 1]} : vector<8x9xi32> to vector<8x1xi32>
    %43 = vector.shape_cast %42 : vector<8x1xi32> to vector<8xi32>
    %44 = vector.shape_cast %43 : vector<8xi32> to vector<8x1xi32>
    %c38_i32 = arith.constant 38 : i32
    %45 = vector.broadcast %c38_i32 : i32 to vector<8x1xi32>
    %46 = arith.addi %44, %45 : vector<8x1xi32>
    %47 = vector.broadcast %46 : vector<8x1xi32> to vector<8x128xi32>
    %48 = arith.cmpi eq, %10, %47 : vector<8x128xi32>
    %49 = arith.ori %41, %48 : vector<8x128xi1>
    %50 = vector.extract_strided_slice %0 {offsets = [0, 6], sizes = [8, 1], strides = [1, 1]} : vector<8x9xi32> to vector<8x1xi32>
    %51 = vector.shape_cast %50 : vector<8x1xi32> to vector<8xi32>
    %52 = vector.shape_cast %51 : vector<8xi32> to vector<8x1xi32>
    %c44_i32 = arith.constant 44 : i32
    %53 = vector.broadcast %c44_i32 : i32 to vector<8x1xi32>
    %54 = arith.addi %52, %53 : vector<8x1xi32>
    %55 = vector.broadcast %54 : vector<8x1xi32> to vector<8x128xi32>
    %56 = arith.cmpi eq, %10, %55 : vector<8x128xi32>
    %57 = arith.ori %49, %56 : vector<8x128xi1>
    %58 = vector.extract_strided_slice %0 {offsets = [0, 7], sizes = [8, 1], strides = [1, 1]} : vector<8x9xi32> to vector<8x1xi32>
    %59 = vector.shape_cast %58 : vector<8x1xi32> to vector<8xi32>
    %60 = vector.shape_cast %59 : vector<8xi32> to vector<8x1xi32>
    %c50_i32 = arith.constant 50 : i32
    %61 = vector.broadcast %c50_i32 : i32 to vector<8x1xi32>
    %62 = arith.addi %60, %61 : vector<8x1xi32>
    %63 = vector.broadcast %62 : vector<8x1xi32> to vector<8x128xi32>
    %64 = arith.cmpi eq, %10, %63 : vector<8x128xi32>
    %65 = arith.ori %57, %64 : vector<8x128xi1>
    %66 = vector.extract_strided_slice %0 {offsets = [0, 8], sizes = [8, 1], strides = [1, 1]} : vector<8x9xi32> to vector<8x1xi32>
    %67 = vector.shape_cast %66 : vector<8x1xi32> to vector<8xi32>
    %68 = vector.shape_cast %67 : vector<8xi32> to vector<8x1xi32>
    %c52_i32 = arith.constant 52 : i32
    %69 = vector.broadcast %c52_i32 : i32 to vector<8x1xi32>
    %70 = arith.addi %68, %69 : vector<8x1xi32>
    %71 = vector.broadcast %70 : vector<8x1xi32> to vector<8x128xi32>
    %72 = arith.cmpi eq, %10, %71 : vector<8x128xi32>
    %73 = arith.ori %65, %72 : vector<8x128xi1>
    %74 = arith.extui %73 : vector<8x128xi1> to vector<8x128xi32>
    %75 = arith.sitofp %74 : vector<8x128xi32> to vector<8x128xf32>
    %76 = arith.truncf %75 : vector<8x128xf32> to vector<8x128xbf16>
    %c0_1 = arith.constant 0 : index
    %c0_2 = arith.constant 0 : index
    %77 = vector.load %arg2[%c0_1, %c0_2] : memref<256x32xbf16, #tpu.memory_space<vmem>>, vector<128x32xbf16>
    %cst = arith.constant dense<0.000000e+00> : vector<8x32xf32>
    %78 = tpu.matmul %9, %77, %cst {dimension_numbers = #tpu.dot_dimension_numbers<[1], [0], [0], [1], [0, 0, 1, 1], [], []>} : vector<8x128xbf16>, vector<128x32xbf16>, vector<8x32xf32> -> vector<8x32xf32>
    %c128 = arith.constant 128 : index
    %c0_3 = arith.constant 0 : index
    %79 = vector.load %arg2[%c128, %c0_3] : memref<256x32xbf16, #tpu.memory_space<vmem>>, vector<128x32xbf16>
    %cst_4 = arith.constant dense<0.000000e+00> : vector<8x32xf32>
    %80 = tpu.matmul %76, %79, %cst_4 {dimension_numbers = #tpu.dot_dimension_numbers<[1], [0], [0], [1], [0, 0, 1, 1], [], []>} : vector<8x128xbf16>, vector<128x32xbf16>, vector<8x32xf32> -> vector<8x32xf32>
    %81 = arith.addf %78, %80 : vector<8x32xf32>
    %c0_5 = arith.constant 0 : index
    %c0_6 = arith.constant 0 : index
    %82 = vector.load %arg3[%c0_5, %c0_6] : memref<8x32xf32, #tpu.memory_space<vmem>>, vector<8x32xf32>
    tpu.vector_store %arg3[%c0_5, %c0_6], %81 {strides = array<i32>} : memref<8x32xf32, #tpu.memory_space<vmem>>, vector<8x32xf32>,
    return
  }
  func.func @transform_0(%arg0: i32) -> (i32, i32) {
    %c0_i32 = arith.constant 0 : i32
    %c0_i32_0 = arith.constant 0 : i32
    return %arg0, %c0_i32 : i32, i32
  }
  func.func @transform_1(%arg0: i32) -> (i32, i32) {
    %c0_i32 = arith.constant 0 : i32
    %c0_i32_0 = arith.constant 0 : i32
    %c0_i32_1 = arith.constant 0 : i32
    return %c0_i32, %c0_i32_0 : i32, i32
  }
  func.func @transform_2(%arg0: i32) -> (i32, i32) {
    %c0_i32 = arith.constant 0 : i32
    %c0_i32_0 = arith.constant 0 : i32
    return %arg0, %c0_i32 : i32, i32
  }
}

</mosaic_0001>

<bundles_post_ra>
// kernel: tpu_custom_call.1
= control target key start
LH: loop header
LB: loop body
LE: loop exit
PB: predicated region body
PF: predicated region fallthrough
CT: control target
= control target key end

     0   :  { %7 = vsyncpa [#allocation3], 0  ;;  %s806_s0 = inlined_call_operand.vmem [shape: s32[16,9], index: 0, kind: input, shape index: {}]   ;;  %s807_s1 = inlined_call_operand.vmem [shape: bf16[256,32], index: 1, kind: input, shape index: {}]   ;;  %s808_s2 = inlined_call_operand.hbm [shape: f32[16,32], index: 2, kind: output, shape index: {}]  }
   0x1   :  { %9 = vsyncpa [#allocation3 + $0x1], 0  ;;  %s673_s9 = smov 0   ;;  %s675_s10 = smov 0  }
   0x2   :  { %s677_s11 = smov 0   ;;  %s679_s12 = smov 0  }
   0x3 LB: > { %s694_s13 = sadd.s32 4294967295, %s645_s12   ;;  %s429_s14 = sadd.s32 4294967294, %s645_s12   ;;  %s645_s12 = sphi %s679_s12, %s814_s12   ;;  %s641_s11 = sphi %s677_s11, %s813_s11   ;;  %s637_s10 = sphi %s675_s10, %s812_s10   ;;  %s633_s9 = sphi %s673_s9, %s811_s9  }
   0x4   : > { %s698_s15 = sadd.s32 1, %s645_s12   ;;  %s69_s16 = sadd.s32 1, %s641_s11 }
   0x5   : > { %s66_s17 = ssub.s32 %s645_s12, %s698_s15  ;;  %p79_p0 = scmp.ne.s32.totalorder %s641_s11, %s637_s10 }
   0x6   : > { %p67_p1 = scmp.eq.s32.totalorder %s66_s17, 0  ;;  %p80_p2 = scmp.eq.s32.totalorder %s694_s13, 1 }
   0x7   : > { %p85_p3 = scmp.ne.s32.totalorder %s637_s10, %s633_s9  ;;  %p86_p4 = scmp.eq.s32.totalorder %s429_s14, 1 }
   0x8   : > { %s709_s18 = scalar_select %p67_p1, %s641_s11, %s69_s16  }
   0x9   : > { %p711_p5 = por %p80_p2, %p79_p0  ;;  %p715_p6 = por %p86_p4, %p85_p3 }
   0xa   : > { %p432_p7 = scmp.ge.s32.totalorder %s645_s12, 1  ;;  %p114_p8 = scmp.lt.s32.totalorder %s645_s12, 3 }
   0xc   : > { %p115_p9 = pnand %p432_p7, %p114_p8 }
   0xd   : > { %p135_p10 = scmp.lt.s32.totalorder (!%p115_p9), %s694_s13, 1  ;;  %s132_s17 = sand.u32 (!%p115_p9), 1, %s637_s10  }
   0xe   : > { %118 = sbr.rel (%p115_p9) target bundleno = 299 (0x12b), region = 28  ;;  %s504_s21 = sshll.u32 (!%p115_p9), %s694_s13, 3 }
   0xf   : > { %s433_s22 = sshll.u32 (!%p115_p9), %s132_s17, 3  ;;  %s355_s29 = scalar_lea.sflag (!%p115_p9), [#allocation3], %s132_s17 }
  0x10   : > { %s134_s26 = scalar_lea.vmem (!%p115_p9), [#allocation2], %s433_s22 }
  0x11   : > { %s367_s27 = sshll.u32 (!%p115_p9), %s134_s26, 4  ;;  %s368_s27 = int_to_ptr.vmem [resolvable:$true] %s367_s27 }
  0x13   : > { %v514_v0 = vld [vmem:[%s807_s1 + $0x38] sm:$0xff]  ;;  %v647_v1 = vmov 1   ;;  %v648_v2 = vmov 3   ;;  %s136_s25 = scalar_select %p135_p10, %s694_s13, 1  ;;  %v649_v4 = vmov 5   ;;  %v513_v5 = vld [vmem:[%s807_s1 + $0x30] sm:$0xff]  ;;  %v140_v36 = vlaneseq }
  0x14   : > { %573 = vset.pattern.permute.xlu0 %v647_v1  ;;  %575 = vset.pattern.permute.xlu1 %v648_v2  ;;  %v522_v3 = vld [vmem:[%s807_s1 + $0x78] sm:$0xff]  ;;  %v521_v6 = vld [vmem:[%s807_s1 + $0x70] sm:$0xff]  ;;  %v512_v8 = vld [vmem:[%s807_s1 + $0x28] sm:$0xff]  ;;  %v650_v13 = vmov 2   ;;  %v651_v15 = vmov 4   ;;  %v652_v16 = vmov 6  }
  0x15   : > { %577 = vset.pattern.permute.xlu2 %v649_v4  ;;  %339 = vmatpush.bf16.msra.mxu1 %v514_v0  ;;  %s434_s30 = sshll.u32 %s136_s25, 3  ;;  %v653_v18 = vmov 0   ;;  %v654_v20 = vmov 7   ;;  %v655_v21 = vmov 8   ;;  %v511_v22 = vld [vmem:[%s807_s1 + $0x20] sm:$0xff]  ;;  %v520_v23 = vld [vmem:[%s807_s1 + $0x68] sm:$0xff]  ;;  %s365_s25 = scalar_lea.hbm %s808_s2, %s504_s21 }
  0x16   : > { %278 = vmatpush.bf16.msra.mxu0 %v522_v3  ;;  %s138_s5 = scalar_lea.vmem %s806_s0, %s434_s30  ;;  %v510_v24 = vld [vmem:[%s807_s1 + $0x18] sm:$0xff]  ;;  %v519_v25 = vld [vmem:[%s807_s1 + $0x60] sm:$0xff]  ;;  %v509_v26 = vld [vmem:[%s807_s1 + $0x10] sm:$0xff]  ;;  %v141_v37 = vand.u32 127, %v140_v36  ;;  %v656_v44 = vmov 1.0|1.0  }
  0x17   : > { %v139_v7 = vld [vmem:[%s138_s5] sm:$0xff]  ;;  %v518_v27 = vld [vmem:[%s807_s1 + $0x58] sm:$0xff]  ;;  %v508_v28 = vld [vmem:[%s807_s1 + $0x8] sm:$0xff]  ;;  %v657_v45 = vmov 0.0   ;;  %s369_s28 = sshll.u32 %s365_s25, 4  ;;  %s603_s5 = scalar_lea.hbm %s808_s2, 16  ;;  %s370_s28 = int_to_ptr.hbm [resolvable:$true] %s369_s28 }
  0x18   : > { %150 = vperm.xlu0 %573, %v139_v7   ;;  %v159_v9 = vadd.s32 16, %v139_v7  ;;  %v171_v10 = vadd.s32 38, %v139_v7  ;;  %v153_v11 = vadd.s32 4, %v139_v7  ;;  %v165_v12 = vadd.s32 28, %v139_v7  ;;  %v517_v29 = vld [vmem:[%s807_s1 + $0x50] sm:$0xff]  ;;  %v507_v30 = vld [vmem:[%s807_s1] sm:$0xff] }
  0x19   : > { %340 = vmatpush.bf16.msra.mxu1 %v513_v5  ;;  %v177_v14 = vadd.s32 44, %v139_v7  ;;  %v183_v17 = vadd.s32 50, %v139_v7  ;;  %v189_v19 = vadd.s32 52, %v139_v7  ;;  %v516_v31 = vld [vmem:[%s807_s1 + $0x48] sm:$0xff]  ;;  %v515_v32 = vld [vmem:[%s807_s1 + $0x40] sm:$0xff]  ;;  %s597_s30 = sshra.s32 %s370_s28, 4  ;;  %s598_s30 = int_to_ptr.hbm [resolvable:$true] %s597_s30 }
  0x1a   : > { %279 = vmatpush.bf16.msra.mxu0 %v521_v6  ;;  %161 = vperm.xlu1 %575, %v159_v9   ;;  %s599_s13 = scalar_lea.hbm %s598_s30, 8  ;;  %p604_p0 = scmp.lt.s32.totalorder %s598_s30, %s808_s2 }
  0x1b   : > { %173 = vperm.xlu2 %577, %v171_v10   ;;  %p600_p11 = scmp.ne.s32.totalorder %s598_s30, %s599_s13  ;;  %p605_p1 = scmp.lt.s32.totalorder %s603_s5, %s599_s13 }
  0x1d   : > { %341 = vmatpush.bf16.msra.mxu1 %v512_v8  ;;  %p601_p12 = pnand %p600_p11, %p711_p5  ;;  %p606_p2 = por %p605_p1, %p604_p0 }
  0x1e   : > { %280 = vmatpush.bf16.msra.mxu0 %v520_v23 }
  0x1f   : > { %p602_p13 = pneg %p601_p12 }
  0x20   : > { %574 = vset.pattern.permute.xlu0 %v650_v13 }
  0x21   : > { %155 = vperm.xlu0 %574, %v153_v11   ;;  %342 = vmatpush.bf16.msra.mxu1 %v511_v22  ;;  %p607_p3 = pnand %p606_p2, %p602_p13 }
  0x22   : > { %576 = vset.pattern.permute.xlu1 %v651_v15  ;;  %281 = vmatpush.bf16.msra.mxu0 %v519_v25 }
  0x23   : > { %167 = vperm.xlu1 %576, %v165_v12   ;;  %578 = vset.pattern.permute.xlu2 %v652_v16 }
  0x24   : > { %179 = vperm.xlu2 %578, %v177_v14  }
  0x25   : > { %343 = vmatpush.bf16.msra.mxu1 %v510_v24 }
  0x26   : > { %282 = vmatpush.bf16.msra.mxu0 %v518_v27 }
  0x29   : > { %581 = vset.pattern.permute.xlu0 %v653_v18  ;;  %344 = vmatpush.bf16.msra.mxu1 %v509_v26 }
  0x2a   : > { %143 = vperm.xlu0 %581, %v139_v7   ;;  %283 = vmatpush.bf16.msra.mxu0 %v517_v29 }
  0x2b   : > { %579 = vset.pattern.permute.xlu1 %v654_v20 }
  0x2c   : > { %185 = vperm.xlu1 %579, %v183_v17   ;;  %580 = vset.pattern.permute.xlu2 %v655_v21 }
  0x2d   : > { %191 = vperm.xlu2 %580, %v189_v19   ;;  %345 = vmatpush.bf16.msra.mxu1 %v508_v28 }
  0x2e   : > { %284 = vmatpush.bf16.msra.mxu0 %v516_v31 }
  0x31   : > { %346 = vmatpush.bf16.msra.mxu1 %v507_v30 }
  0x32   : > { %582 = vset.pattern.permute.xlu0 %v655_v21  ;;  %285 = vmatpush.bf16.msra.mxu0 %v515_v32 }
  0x75   : > { %v174_v33 = vpop.permute.xlu2 %173 }
  0x76   : > { %vm175_vm7 = vcmp.eq.s32.totalorder %v141_v37, %v174_v33 }
  0x7e   : > { %v180_v38 = vpop.permute.xlu2 %179 }
  0x7f   : > { %vm181_vm9 = vcmp.eq.s32.totalorder %v141_v37, %v180_v38 }
  0x87   : > { %v192_v41 = vpop.permute.xlu2 %191 }
  0x88   : > { %vm193_vm12 = vcmp.eq.s32.totalorder %v141_v37, %v192_v41 }
  0x8a   : > { %v151_v34 = vpop.permute.xlu0 %150 }
  0x8b   : > { %vm152_vm0 = vcmp.eq.s32.totalorder %v141_v37, %v151_v34 }
  0x8c   : > { %v162_v35 = vpop.permute.xlu1 %161 }
  0x8d   : > { %vm163_vm2 = vcmp.eq.s32.totalorder %v141_v37, %v162_v35 }
  0x93   : > { %v156_v39 = vpop.permute.xlu0 %155 }
  0x94   : > { %vm157_vm1 = vcmp.eq.s32.totalorder %v141_v37, %v156_v39 }
  0x95   : > { %vm158_vm3 = vmor %vm152_vm0, %vm157_vm1  ;;  %v168_v40 = vpop.permute.xlu1 %167  ;;  %vm352_vm1 = vcmask 261120  }
  0x96   : > { %vm164_vm4 = vmor %vm158_vm3, %vm163_vm2  ;;  %vm169_vm5 = vcmp.eq.s32.totalorder %v141_v37, %v168_v40 }
  0x97   : > { %vm170_vm6 = vmor %vm164_vm4, %vm169_vm5 }
  0x98   : > { %vm176_vm8 = vmor %vm170_vm6, %vm175_vm7 }
  0x99   : > { %vm182_vm13 = vmor %vm176_vm8, %vm181_vm9 }
  0x9c   : > { %v144_v42 = vpop.permute.xlu0 %143 }
  0x9d   : > { %vm145_vm10 = vcmp.eq.s32.totalorder %v141_v37, %v144_v42 }
  0x9e   : > { %vm501_vm11 = vmpackc.low %vm145_vm10, %vm145_vm10  ;;  %v186_v43 = vpop.permute.xlu1 %185 }
  0x9f   : > { %vm187_vm14 = vcmp.eq.s32.totalorder %v141_v37, %v186_v43  ;;  %502 = vmatmul.msk.bf16.vlgmr.msra.gmra.mxu1 %vm501_vm11, %v656_v44 }
  0xa0   : > { %vm188_vm15 = vmor %vm182_vm13, %vm187_vm14 }
  0xa1   : > { %vm194_vm0 = vmor %vm188_vm15, %vm193_vm12 }
  0xa2   : > { %v436_v46 = vsel %vm194_vm0, 1.0, %v657_v45 }
  0xa3   : > { %v197_v47 = vpack.c.bf16 %v436_v46, %v436_v46 }
  0xa5   : > { %286 = vmatmul.bf16.vlgmr.msra.gmra.mxu0 %v197_v47 }
 0x11c   : > { %v348_v48 = vpop.f32.mrf.mxu1 }
 0x122   : > { %v287_v49 = vpop.f32.mrf.mxu0 }
 0x123   : > { %v349_v50 = vadd.f32 %v348_v48, %v287_v49 }
 0x124   : > { %v350_v51 = vpop.f32.mrf.mxu1 }
 0x125   : > { %353 = vst.msk [vmem:[%s134_s26] sm:$0xff] %vm352_vm1, %v349_v50 }
 0x126   : > { %610 = shalt.err (!%p607_p3)
}
 0x127   : > { %523 = dma.vmem_to_hbm [thread:$0]  (%p711_p5), %s368_s27, 128, %s370_s28, %s355_s29  }
 0x12a   : > { %v289_v52 = vpop.f32.mrf.mxu0 }
 0x12b PF: > { %p529_p4 = scmp.ge.s32.totalorder %s645_s12, 2  ;;  %s381_s8 = sand.u32 1, %s633_s9  }
 0x12c   : > { %s382_s14 = scalar_lea.sflag [#allocation3], %s381_s8 }
 0x12d   : > { %p526_p7 = pnand %p529_p4, %p715_p6 }
 0x12f   : > { %p527_p8 = pneg %p526_p7 }
 0x131   : > { %628 = dma.done.wait (%p527_p8), %s382_s14, 128  }
 0x132   : > { %630 = vsyncadd (%p527_p8), %s382_s14, 4294967168  ;;  %p12_p9 = scmp.ge.s32.totalorder %s698_s15, 4   ;;  %s811_s9 = smov %s637_s10 }
 0x133   : > { %s812_s10 = smov %s641_s11  ;;  %s813_s11 = smov %s709_s18 }
 0x134   : > { %s814_s12 = smov %s698_s15  ;;  %14 = sbr.rel (!%p12_p9) target bundleno = 3 (0x3), region = 63 }
 0x139   :  { %388 = vsyncpa [#allocation3], 1 }
 0x13a   :  { %390 = vsyncpa [#allocation3 + $0x1], 1 }

</bundles_post_ra>
